<compile_context>
chip_gen: v7x
topology: tpu7x:2x2x1
jax: 0.10.0
libtpu: 0.0.40
codegen_flags: <defaults>
</compile_context>

<pallas_src>
import functools
import math

import jax
import jax.numpy as jnp
from jax.experimental import pallas as pl
from jax.experimental.pallas import tpu as pltpu

n_embd = 64
block_size = 32   # maximum sequence length supported by the causal mask
dropout = 0.0     # nn.Dropout(0.0) is the identity -> omitted in the kernel


def head_kernel(x_ref, wq_ref, wk_ref, wv_ref, o_ref, *, seq_len, lane_dense):
    """One grid step = one block of `bblk` batch rows.

    x_ref : (bblk*T, C)  activations for this batch block (f32 in HBM)
    w*_ref: (C, H)       bf16 projection weights (wq already scaled by C**-0.5)
    o_ref : (bblk, T*H)  lane-dense output  (or (bblk, T, H) on the fallback path)
    """
    T = seq_len
    H = wq_ref.shape[1]
    bblk = x_ref.shape[0] // T

    x = x_ref[...].astype(jnp.bfloat16)                          # (bblk*T, C)

    # Three tall MXU matmuls against the resident weights; each result is lane-0
    # aligned, so no XLU lane-rolls are needed to separate q/k/v.
    q = jnp.dot(x, wq_ref[...], preferred_element_type=jnp.float32)
    k = jnp.dot(x, wk_ref[...], preferred_element_type=jnp.float32)
    v = jnp.dot(x, wv_ref[...], preferred_element_type=jnp.float32)
    q = q.astype(jnp.bfloat16).reshape(bblk, T, H)
    k = k.astype(jnp.bfloat16).reshape(bblk, T, H)
    v = v.astype(jnp.bfloat16).reshape(bblk, T, H)

    # Attention scores: contract the head dim directly (no explicit k.T relayout).
    # The 1/sqrt(C) score scale is already folded into wq at trace time.
    s = jnp.einsum("bth,bsh->bts", q, k,
                   preferred_element_type=jnp.float32)           # (bblk, T, T)

    # Causal (lower-triangular) mask.  The diagonal is always kept, so every row
    # max is finite and the softmax below is NaN-free.  (Rows belonging to a
    # padded tail batch block may hold garbage, but Pallas discards the
    # out-of-range part of the output block, so they never reach HBM.)
    row = jax.lax.broadcasted_iota(jnp.int32, (T, T), 0)
    col = jax.lax.broadcasted_iota(jnp.int32, (T, T), 1)
    s = jnp.where((col <= row)[None, :, :], s, -jnp.inf)

    # Softmax in f32 (no bf16 VPU on v5e); the divide goes to the EUP via the
    # approximate reciprocal (free bundle slot).
    s = s - jnp.max(s, axis=-1, keepdims=True)
    p = jnp.exp(s)
    p = p * pl.reciprocal(jnp.sum(p, axis=-1, keepdims=True), approx=True)

    # dropout(p=0.0) is the identity -> omitted.

    out = jnp.einsum("bts,bsh->bth", p.astype(jnp.bfloat16), v,
                     preferred_element_type=jnp.float32)         # (bblk, T, H)

    if lane_dense:
        # Lane-dense store: last dim T*H is a multiple of 128 -> unmasked vst and a
        # dense writeback DMA (the biggest single lever per the perf review).
        o_ref[...] = out.reshape(bblk, T * H).astype(o_ref.dtype)
    else:
        o_ref[...] = out.astype(o_ref.dtype)


def _default_max_bblk():
    """Per-generation batch-block cap.

    v5e: ~820 GB/s HBM is already amortized by ~1 MiB x tiles and its scoped-VMEM
    default is only 16 MiB -> cap at 128.  v6e/v7x: 256 (2 MiB f32 x tile per step)
    keeps the 128-lane-padded score/qkv intermediates comfortably inside v7x's
    64 MiB physical VMEM while amortizing the ~0.35 us/step pipeline overhead.
    """
    try:
        kind = jax.devices()[0].device_kind.lower()
    except Exception:
        return 128
    return 128 if "v5" in kind else 256


def _choose_batch_block(B, max_bblk=None):
    if max_bblk is None:
        max_bblk = _default_max_bblk()
    bblk = min(B, max_bblk)
    if bblk < B and bblk % 8:
        # Blocks smaller than the full batch must keep the (8,128) sublane rule.
        bblk = max(8, (bblk // 8) * 8)
    return bblk


def _vmem_limit_bytes(bblk, T, C, H):
    """Generous per-step footprint estimate, counting the 128-lane padding of the
    narrow-minor intermediates and double-buffered I/O blocks."""
    rows = bblk * T
    per_row = (
        4 * C * 2            # f32 x block, double-buffered
        + 2 * C              # bf16 copy of x
        + 3 * 128 * (4 + 2)  # q/k/v f32 + bf16 copies, lane-padded to 128
        + 4 * 128 * 4        # scores / exp / softmax temporaries, lane-padded
        + 128 * 4            # (bblk,T,H) f32 attention output value, lane-padded
        + 4 * H * 3          # lane-dense out value + double-buffered out block
    )
    est = rows * per_row * 3 // 2          # headroom for compiler temporaries
    # Clamp: above the 16/32 MiB scoped defaults, below v7x's 64 MiB physical VMEM.
    return int(min(max(est, 32 << 20), 48 << 20))


def _head_pallas(x2d, wq_s, wk_b, wv_b, *, B, T, H, bblk, lane_dense):
    C = x2d.shape[1]
    grid = (pl.cdiv(B, bblk),)

    if lane_dense:
        out_shape = jax.ShapeDtypeStruct((B, T * H), x2d.dtype)
        out_spec = pl.BlockSpec((bblk, T * H), lambda b: (b, 0))
    else:
        out_shape = jax.ShapeDtypeStruct((B, T, H), x2d.dtype)
        out_spec = pl.BlockSpec((bblk, T, H), lambda b: (b, 0, 0))

    out = pl.pallas_call(
        functools.partial(head_kernel, seq_len=T, lane_dense=lane_dense),
        out_shape=out_shape,
        grid=grid,
        in_specs=[
            pl.BlockSpec((bblk * T, C), lambda b: (b, 0)),   # batch block of x, flattened
            pl.BlockSpec((C, H), lambda b: (0, 0)),          # wq (scaled), resident
            pl.BlockSpec((C, H), lambda b: (0, 0)),          # wk, resident
            pl.BlockSpec((C, H), lambda b: (0, 0)),          # wv, resident
        ],
        out_specs=out_spec,
        compiler_params=pltpu.CompilerParams(
            dimension_semantics=("parallel",),
            vmem_limit_bytes=_vmem_limit_bytes(bblk, T, C, H),
        ),
    )(x2d, wq_s, wk_b, wv_b)

    if lane_dense:
        out = out.reshape(B, T, H)   # free: identical HBM layout
    return out


def head_forward(x, wk, wq, wv, *, max_bblk=None):
    """x: (B, T, C) f32; wk/wq/wv: (C, H) nn.Linear weights (pre-transposed).

    Returns (B, T, H), matching PyTorch Head.forward semantics (dropout p=0.0).
    """
    B, T, C = x.shape
    H = wk.shape[1]
    assert T <= block_size, "sequence length exceeds block_size"
    assert T % 8 == 0, "flattened (B*T, C) layout requires T to be a multiple of 8"

    # Fold the 1/sqrt(C) score scale into the query weights (trace time, free) and
    # hand the tiny weights to the kernel in bf16 (MXU-native).
    scale = float(C) ** -0.5
    wq_s = (wq * scale).astype(jnp.bfloat16)
    wk_b = wk.astype(jnp.bfloat16)
    wv_b = wv.astype(jnp.bfloat16)

    # TODO(synk): if the producer can hand x over in bf16, take it directly — x is
    # ~80% of HBM traffic.  A standalone wrapper-side cast would add a full extra
    # HBM round trip of x, so it is intentionally NOT done here.
    x2d = x.reshape(B * T, C)

    bblk = _choose_batch_block(B, max_bblk)
    try:
        return _head_pallas(x2d, wq_s, wk_b, wv_b,
                            B=B, T=T, H=H, bblk=bblk, lane_dense=True)
    except Exception:
        # Fallback if this Mosaic build cannot lower the (bblk, T, H) -> (bblk, T*H)
        # minor-dim-merging reshape: identical math, 3-D (masked-store) output block.
        return _head_pallas(x2d, wq_s, wk_b, wv_b,
                            B=B, T=T, H=H, bblk=bblk, lane_dense=False)


def reference_forward(x, wk, wq, wv):
    """Pure-JAX reference reproducing the PyTorch forward exactly (f32 math)."""
    B, T, C = x.shape
    k = x @ wk
    q = x @ wq
    v = x @ wv
    wei = jnp.einsum("btd,bsd->bts", q, k) * C ** (-0.5)
    tril = jnp.tril(jnp.ones((T, T), dtype=bool))
    wei = jnp.where(tril, wei, -jnp.inf)
    wei = jax.nn.softmax(wei, axis=-1)
    return wei @ v


if __name__ == "__main__":
    B, T, C = 2, 8, n_embd
    head_size = 16

    key = jax.random.PRNGKey(0)
    kx, kk, kq, kv = jax.random.split(key, 4)

    x = jax.random.normal(kx, (B, T, C), dtype=jnp.float32)

    # nn.Linear(n_embd, head_size, bias=False) init: U(-1/sqrt(in), 1/sqrt(in)),
    # stored here already transposed to (n_embd, head_size).
    bound = 1.0 / math.sqrt(n_embd)
    wk = jax.random.uniform(kk, (C, head_size), jnp.float32, -bound, bound)
    wq = jax.random.uniform(kq, (C, head_size), jnp.float32, -bound, bound)
    wv = jax.random.uniform(kv, (C, head_size), jnp.float32, -bound, bound)

    out = jax.block_until_ready(head_forward(x, wk, wq, wv))
    ref = reference_forward(x, wk, wq, wv)

    assert out.shape == (B, T, head_size)
    # bf16 MXU operands + approximate reciprocal -> compare with a loose tolerance.
    assert jnp.allclose(out, ref, atol=2e-2, rtol=2e-2), "mismatch vs reference"

    print("KERNEL_OK")
</pallas_src>

<mosaic_0001>
module attributes {stable_mosaic.version = 11 : i64} {
  func.func @head_kernel(%arg0: i32, %arg1: memref<16x64xf32, #tpu.memory_space<vmem>>, %arg2: memref<64x16xbf16, #tpu.memory_space<vmem>>, %arg3: memref<64x16xbf16, #tpu.memory_space<vmem>>, %arg4: memref<64x16xbf16, #tpu.memory_space<vmem>>, %arg5: memref<2x128xf32, #tpu.memory_space<vmem>>) attributes {dimension_semantics = [#tpu.dimension_semantics<parallel>], iteration_bounds = array<i64: 1>, scalar_prefetch = 0 : i64, scratch_operands = 0 : i64, tpu.core_type = #tpu.core_type<tc>, window_params = [{transform_indices = @transform_0, window_bounds = array<i64: 16, 64>}, {pipeline_mode = #tpu.pipeline_mode<synchronous>, transform_indices = @transform_1, window_bounds = array<i64: 64, 16>}, {pipeline_mode = #tpu.pipeline_mode<synchronous>, transform_indices = @transform_2, window_bounds = array<i64: 64, 16>}, {pipeline_mode = #tpu.pipeline_mode<synchronous>, transform_indices = @transform_3, window_bounds = array<i64: 64, 16>}, {transform_indices = @transform_4, window_bounds = array<i64: 2, 128>}]} {
    %c0 = arith.constant 0 : index
    %c0_0 = arith.constant 0 : index
    %0 = vector.load %arg1[%c0, %c0_0] : memref<16x64xf32, #tpu.memory_space<vmem>>, vector<16x64xf32>
    %1 = arith.truncf %0 : vector<16x64xf32> to vector<16x64xbf16>
    %c0_1 = arith.constant 0 : index
    %c0_2 = arith.constant 0 : index
    %2 = vector.load %arg2[%c0_1, %c0_2] : memref<64x16xbf16, #tpu.memory_space<vmem>>, vector<64x16xbf16>
    %cst = arith.constant dense<0.000000e+00> : vector<16x16xf32>
    %3 = tpu.matmul %1, %2, %cst {dimension_numbers = #tpu.dot_dimension_numbers<[1], [0], [0], [1], [0, 0, 1, 1], [], []>} : vector<16x64xbf16>, vector<64x16xbf16>, vector<16x16xf32> -> vector<16x16xf32>
    %c0_3 = arith.constant 0 : index
    %c0_4 = arith.constant 0 : index
    %4 = vector.load %arg3[%c0_3, %c0_4] : memref<64x16xbf16, #tpu.memory_space<vmem>>, vector<64x16xbf16>
    %cst_5 = arith.constant dense<0.000000e+00> : vector<16x16xf32>
    %5 = tpu.matmul %1, %4, %cst_5 {dimension_numbers = #tpu.dot_dimension_numbers<[1], [0], [0], [1], [0, 0, 1, 1], [], []>} : vector<16x64xbf16>, vector<64x16xbf16>, vector<16x16xf32> -> vector<16x16xf32>
    %c0_6 = arith.constant 0 : index
    %c0_7 = arith.constant 0 : index
    %6 = vector.load %arg4[%c0_6, %c0_7] : memref<64x16xbf16, #tpu.memory_space<vmem>>, vector<64x16xbf16>
    %cst_8 = arith.constant dense<0.000000e+00> : vector<16x16xf32>
    %7 = tpu.matmul %1, %6, %cst_8 {dimension_numbers = #tpu.dot_dimension_numbers<[1], [0], [0], [1], [0, 0, 1, 1], [], []>} : vector<16x64xbf16>, vector<64x16xbf16>, vector<16x16xf32> -> vector<16x16xf32>
    %8 = arith.truncf %3 : vector<16x16xf32> to vector<16x16xbf16>
    %9 = vector.shape_cast %8 : vector<16x16xbf16> to vector<2x8x16xbf16>
    %10 = arith.truncf %5 : vector<16x16xf32> to vector<16x16xbf16>
    %11 = vector.shape_cast %10 : vector<16x16xbf16> to vector<2x8x16xbf16>
    %12 = arith.truncf %7 : vector<16x16xf32> to vector<16x16xbf16>
    %13 = vector.shape_cast %12 : vector<16x16xbf16> to vector<2x8x16xbf16>
    "tpu.trace_start"() <{level = 10 : i32, message = "bth,bsh->bts"}> : () -> ()
    %cst_9 = arith.constant dense<0.000000e+00> : vector<2x8x8xf32>
    %14 = tpu.matmul %9, %11, %cst_9 {dimension_numbers = #tpu.dot_dimension_numbers<[2], [2], [1], [1], [0, 0, 0, 1, 1, 1], [0], [0]>} : vector<2x8x16xbf16>, vector<2x8x16xbf16>, vector<2x8x8xf32> -> vector<2x8x8xf32>
    "tpu.trace_stop"() : () -> ()
    %15 = tpu.iota {dimensions = array<i32: 0>} : vector<8x8xi32>
    %16 = tpu.iota {dimensions = array<i32: 1>} : vector<8x8xi32>
    %17 = arith.cmpi sle, %16, %15 : vector<8x8xi32>
    %18 = vector.shape_cast %17 : vector<8x8xi1> to vector<1x8x8xi1>
    %cst_10 = arith.constant 0xFF800000 : f32
    %19 = vector.shape_cast %18 : vector<1x8x8xi1> to vector<1x8x8xi1>
    %20 = vector.broadcast %19 : vector<1x8x8xi1> to vector<2x8x8xi1>
    %21 = vector.broadcast %cst_10 : f32 to vector<2x8x8xf32>
    %22 = arith.select %20, %14, %21 : vector<2x8x8xi1>, vector<2x8x8xf32>
    %cst_11 = arith.constant dense<0xFF800000> : vector<2x8xf32>
    %23 = vector.multi_reduction <maximumf>, %22, %cst_11 [2] : vector<2x8x8xf32> to vector<2x8xf32>
    %24 = vector.shape_cast %23 : vector<2x8xf32> to vector<2x8x1xf32>
    %25 = vector.broadcast %24 : vector<2x8x1xf32> to vector<2x8x8xf32>
    %26 = arith.subf %22, %25 : vector<2x8x8xf32>
    %27 = math.exp %26 : vector<2x8x8xf32>
    %cst_12 = arith.constant dense<0.000000e+00> : vector<2x8xf32>
    %28 = vector.multi_reduction <add>, %27, %cst_12 [2] : vector<2x8x8xf32> to vector<2x8xf32>
    %29 = vector.shape_cast %28 : vector<2x8xf32> to vector<2x8x1xf32>
    %30 = tpu.reciprocal %29 {approx = true} : vector<2x8x1xf32> -> vector<2x8x1xf32>
    %31 = vector.broadcast %30 : vector<2x8x1xf32> to vector<2x8x8xf32>
    %32 = arith.mulf %27, %31 : vector<2x8x8xf32>
    %33 = arith.truncf %32 : vector<2x8x8xf32> to vector<2x8x8xbf16>
    "tpu.trace_start"() <{level = 10 : i32, message = "bts,bsh->bth"}> : () -> ()
    %cst_13 = arith.constant dense<0.000000e+00> : vector<2x8x16xf32>
    %34 = tpu.matmul %33, %13, %cst_13 {dimension_numbers = #tpu.dot_dimension_numbers<[2], [1], [1], [2], [0, 0, 0, 1, 1, 2], [0], [0]>} : vector<2x8x8xbf16>, vector<2x8x16xbf16>, vector<2x8x16xf32> -> vector<2x8x16xf32>
    "tpu.trace_stop"() : () -> ()
    %35 = vector.shape_cast %34 : vector<2x8x16xf32> to vector<2x128xf32>
    %c0_14 = arith.constant 0 : index
    %c0_15 = arith.constant 0 : index
    %36 = vector.load %arg5[%c0_14, %c0_15] : memref<2x128xf32, #tpu.memory_space<vmem>>, vector<2x128xf32>
    tpu.vector_store %arg5[%c0_14, %c0_15], %35 {strides = array<i32>} : memref<2x128xf32, #tpu.memory_space<vmem>>, vector<2x128xf32>,
    return
  }
  func.func @transform_0(%arg0: i32) -> (i32, i32) {
    %c0_i32 = arith.constant 0 : i32
    %c0_i32_0 = arith.constant 0 : i32
    return %arg0, %c0_i32 : i32, i32
  }
  func.func @transform_1(%arg0: i32) -> (i32, i32) {
    %c0_i32 = arith.constant 0 : i32
    %c0_i32_0 = arith.constant 0 : i32
    %c0_i32_1 = arith.constant 0 : i32
    return %c0_i32, %c0_i32_0 : i32, i32
  }
  func.func @transform_2(%arg0: i32) -> (i32, i32) {
    %c0_i32 = arith.constant 0 : i32
    %c0_i32_0 = arith.constant 0 : i32
    %c0_i32_1 = arith.constant 0 : i32
    return %c0_i32, %c0_i32_0 : i32, i32
  }
  func.func @transform_3(%arg0: i32) -> (i32, i32) {
    %c0_i32 = arith.constant 0 : i32
    %c0_i32_0 = arith.constant 0 : i32
    %c0_i32_1 = arith.constant 0 : i32
    return %c0_i32, %c0_i32_0 : i32, i32
  }
  func.func @transform_4(%arg0: i32) -> (i32, i32) {
    %c0_i32 = arith.constant 0 : i32
    %c0_i32_0 = arith.constant 0 : i32
    return %arg0, %c0_i32 : i32, i32
  }
}

module attributes {stable_mosaic.version = 11 : i64} {
  func.func @head_kernel(%arg0: i32, %arg1: memref<16x64xf32, #tpu.memory_space<vmem>>, %arg2: memref<64x16xbf16, #tpu.memory_space<vmem>>, %arg3: memref<64x16xbf16, #tpu.memory_space<vmem>>, %arg4: memref<64x16xbf16, #tpu.memory_space<vmem>>, %arg5: memref<2x8x16xf32, #tpu.memory_space<vmem>>) attributes {dimension_semantics = [#tpu.dimension_semantics<parallel>], iteration_bounds = array<i64: 1>, scalar_prefetch = 0 : i64, scratch_operands = 0 : i64, tpu.core_type = #tpu.core_type<tc>, window_params = [{transform_indices = @transform_0, window_bounds = array<i64: 16, 64>}, {pipeline_mode = #tpu.pipeline_mode<synchronous>, transform_indices = @transform_1, window_bounds = array<i64: 64, 16>}, {pipeline_mode = #tpu.pipeline_mode<synchronous>, transform_indices = @transform_2, window_bounds = array<i64: 64, 16>}, {pipeline_mode = #tpu.pipeline_mode<synchronous>, transform_indices = @transform_3, window_bounds = array<i64: 64, 16>}, {transform_indices = @transform_4, window_bounds = array<i64: 2, 8, 16>}]} {
    %c0 = arith.constant 0 : index
    %c0_0 = arith.constant 0 : index
    %0 = vector.load %arg1[%c0, %c0_0] : memref<16x64xf32, #tpu.memory_space<vmem>>, vector<16x64xf32>
    %1 = arith.truncf %0 : vector<16x64xf32> to vector<16x64xbf16>
    %c0_1 = arith.constant 0 : index
    %c0_2 = arith.constant 0 : index
    %2 = vector.load %arg2[%c0_1, %c0_2] : memref<64x16xbf16, #tpu.memory_space<vmem>>, vector<64x16xbf16>
    %cst = arith.constant dense<0.000000e+00> : vector<16x16xf32>
    %3 = tpu.matmul %1, %2, %cst {dimension_numbers = #tpu.dot_dimension_numbers<[1], [0], [0], [1], [0, 0, 1, 1], [], []>} : vector<16x64xbf16>, vector<64x16xbf16>, vector<16x16xf32> -> vector<16x16xf32>
    %c0_3 = arith.constant 0 : index
    %c0_4 = arith.constant 0 : index
    %4 = vector.load %arg3[%c0_3, %c0_4] : memref<64x16xbf16, #tpu.memory_space<vmem>>, vector<64x16xbf16>
    %cst_5 = arith.constant dense<0.000000e+00> : vector<16x16xf32>
    %5 = tpu.matmul %1, %4, %cst_5 {dimension_numbers = #tpu.dot_dimension_numbers<[1], [0], [0], [1], [0, 0, 1, 1], [], []>} : vector<16x64xbf16>, vector<64x16xbf16>, vector<16x16xf32> -> vector<16x16xf32>
    %c0_6 = arith.constant 0 : index
    %c0_7 = arith.constant 0 : index
    %6 = vector.load %arg4[%c0_6, %c0_7] : memref<64x16xbf16, #tpu.memory_space<vmem>>, vector<64x16xbf16>
    %cst_8 = arith.constant dense<0.000000e+00> : vector<16x16xf32>
    %7 = tpu.matmul %1, %6, %cst_8 {dimension_numbers = #tpu.dot_dimension_numbers<[1], [0], [0], [1], [0, 0, 1, 1], [], []>} : vector<16x64xbf16>, vector<64x16xbf16>, vector<16x16xf32> -> vector<16x16xf32>
    %8 = arith.truncf %3 : vector<16x16xf32> to vector<16x16xbf16>
    %9 = vector.shape_cast %8 : vector<16x16xbf16> to vector<2x8x16xbf16>
    %10 = arith.truncf %5 : vector<16x16xf32> to vector<16x16xbf16>
    %11 = vector.shape_cast %10 : vector<16x16xbf16> to vector<2x8x16xbf16>
    %12 = arith.truncf %7 : vector<16x16xf32> to vector<16x16xbf16>
    %13 = vector.shape_cast %12 : vector<16x16xbf16> to vector<2x8x16xbf16>
    "tpu.trace_start"() <{level = 10 : i32, message = "bth,bsh->bts"}> : () -> ()
    %cst_9 = arith.constant dense<0.000000e+00> : vector<2x8x8xf32>
    %14 = tpu.matmul %9, %11, %cst_9 {dimension_numbers = #tpu.dot_dimension_numbers<[2], [2], [1], [1], [0, 0, 0, 1, 1, 1], [0], [0]>} : vector<2x8x16xbf16>, vector<2x8x16xbf16>, vector<2x8x8xf32> -> vector<2x8x8xf32>
    "tpu.trace_stop"() : () -> ()
    %15 = tpu.iota {dimensions = array<i32: 0>} : vector<8x8xi32>
    %16 = tpu.iota {dimensions = array<i32: 1>} : vector<8x8xi32>
    %17 = arith.cmpi sle, %16, %15 : vector<8x8xi32>
    %18 = vector.shape_cast %17 : vector<8x8xi1> to vector<1x8x8xi1>
    %cst_10 = arith.constant 0xFF800000 : f32
    %19 = vector.shape_cast %18 : vector<1x8x8xi1> to vector<1x8x8xi1>
    %20 = vector.broadcast %19 : vector<1x8x8xi1> to vector<2x8x8xi1>
    %21 = vector.broadcast %cst_10 : f32 to vector<2x8x8xf32>
    %22 = arith.select %20, %14, %21 : vector<2x8x8xi1>, vector<2x8x8xf32>
    %cst_11 = arith.constant dense<0xFF800000> : vector<2x8xf32>
    %23 = vector.multi_reduction <maximumf>, %22, %cst_11 [2] : vector<2x8x8xf32> to vector<2x8xf32>
    %24 = vector.shape_cast %23 : vector<2x8xf32> to vector<2x8x1xf32>
    %25 = vector.broadcast %24 : vector<2x8x1xf32> to vector<2x8x8xf32>
    %26 = arith.subf %22, %25 : vector<2x8x8xf32>
    %27 = math.exp %26 : vector<2x8x8xf32>
    %cst_12 = arith.constant dense<0.000000e+00> : vector<2x8xf32>
    %28 = vector.multi_reduction <add>, %27, %cst_12 [2] : vector<2x8x8xf32> to vector<2x8xf32>
    %29 = vector.shape_cast %28 : vector<2x8xf32> to vector<2x8x1xf32>
    %30 = tpu.reciprocal %29 {approx = true} : vector<2x8x1xf32> -> vector<2x8x1xf32>
    %31 = vector.broadcast %30 : vector<2x8x1xf32> to vector<2x8x8xf32>
    %32 = arith.mulf %27, %31 : vector<2x8x8xf32>
    %33 = arith.truncf %32 : vector<2x8x8xf32> to vector<2x8x8xbf16>
    "tpu.trace_start"() <{level = 10 : i32, message = "bts,bsh->bth"}> : () -> ()
    %cst_13 = arith.constant dense<0.000000e+00> : vector<2x8x16xf32>
    %34 = tpu.matmul %33, %13, %cst_13 {dimension_numbers = #tpu.dot_dimension_numbers<[2], [1], [1], [2], [0, 0, 0, 1, 1, 2], [0], [0]>} : vector<2x8x8xbf16>, vector<2x8x16xbf16>, vector<2x8x16xf32> -> vector<2x8x16xf32>
    "tpu.trace_stop"() : () -> ()
    %c0_14 = arith.constant 0 : index
    %c0_15 = arith.constant 0 : index
    %c0_16 = arith.constant 0 : index
    %35 = vector.load %arg5[%c0_14, %c0_15, %c0_16] : memref<2x8x16xf32, #tpu.memory_space<vmem>>, vector<2x8x16xf32>
    tpu.vector_store %arg5[%c0_14, %c0_15, %c0_16], %34 {strides = array<i32>} : memref<2x8x16xf32, #tpu.memory_space<vmem>>, vector<2x8x16xf32>,
    return
  }
  func.func @transform_0(%arg0: i32) -> (i32, i32) {
    %c0_i32 = arith.constant 0 : i32
    %c0_i32_0 = arith.constant 0 : i32
    return %arg0, %c0_i32 : i32, i32
  }
  func.func @transform_1(%arg0: i32) -> (i32, i32) {
    %c0_i32 = arith.constant 0 : i32
    %c0_i32_0 = arith.constant 0 : i32
    %c0_i32_1 = arith.constant 0 : i32
    return %c0_i32, %c0_i32_0 : i32, i32
  }
  func.func @transform_2(%arg0: i32) -> (i32, i32) {
    %c0_i32 = arith.constant 0 : i32
    %c0_i32_0 = arith.constant 0 : i32
    %c0_i32_1 = arith.constant 0 : i32
    return %c0_i32, %c0_i32_0 : i32, i32
  }
  func.func @transform_3(%arg0: i32) -> (i32, i32) {
    %c0_i32 = arith.constant 0 : i32
    %c0_i32_0 = arith.constant 0 : i32
    %c0_i32_1 = arith.constant 0 : i32
    return %c0_i32, %c0_i32_0 : i32, i32
  }
  func.func @transform_4(%arg0: i32) -> (i32, i32, i32) {
    %c0_i32 = arith.constant 0 : i32
    %c0_i32_0 = arith.constant 0 : i32
    %c0_i32_1 = arith.constant 0 : i32
    return %arg0, %c0_i32, %c0_i32_0 : i32, i32, i32
  }
}

</mosaic_0001>

<bundles_post_ra>
// kernel: tpu_custom_call.1
= control target key start
LH: loop header
LB: loop body
LE: loop exit
PB: predicated region body
PF: predicated region fallthrough
CT: control target
= control target key end

     0   :  { %v774_v1 = vmov 0.0   ;;  %vm775_vm0 = vmmov 0   ;;  %s921_s0 = inlined_call_operand.vmem [shape: f32[16,64], index: 0, kind: input, shape index: {}]   ;;  %s922_s1 = inlined_call_operand.vmem [shape: bf16[64,16], index: 1, kind: input, shape index: {}]   ;;  %s923_s2 = inlined_call_operand.vmem [shape: bf16[64,16], index: 2, kind: input, shape index: {}]   ;;  %s924_s3 = inlined_call_operand.vmem [shape: bf16[64,16], index: 3, kind: input, shape index: {}]   ;;  %s925_s4 = inlined_call_operand.hbm [shape: f32[2,128], index: 4, kind: output, shape index: {}]  }
   0x1   :  { %v730_v0 = vld [vmem:[%s923_s2] sm:$0xff]   ;;  %670 = vmatprep.subr.bf16.mxu1 %v774_v1  ;;  %v731_v2 = vld [vmem:[%s923_s2 + $0x8] sm:$0xff]   ;;  %658 = vmatprep.subr.bf16.mxu0 %v774_v1  ;;  %v733_v5 = vld [vmem:[%s923_s2 + $0x10] sm:$0xff]  }
   0x2   :  { %671 = vmatpush3.bf16.msra.mxu1 %v730_v0  ;;  %v732_v3 = vld [vmem:[%s922_s1] sm:$0xff]   ;;  %678 = vmatprep.mubr.msk.bf16.mxu1 %vm775_vm0, %v774_v1  ;;  %v734_v4 = vld [vmem:[%s922_s1 + $0x8] sm:$0xff]   ;;  %v736_v6 = vld [vmem:[%s922_s1 + $0x10] sm:$0xff]  }
   0x3   :  { %672 = vmatprep.subr.bf16.mxu1 %v774_v1  ;;  %666 = vmatprep.mubr.msk.bf16.mxu0 %vm775_vm0, %v774_v1  ;;  %v735_v7 = vld [vmem:[%s923_s2 + $0x18] sm:$0xff]   ;;  %v19_v8 = vld [vmem:[%s921_s0] sm:$0xff]  ;;  %v20_v9 = vld [vmem:[%s921_s0 + $0x8] sm:$0xff] }
   0x4   :  { %659 = vmatpush3.bf16.msra.mxu0 %v732_v3 }
   0x5   :  { %660 = vmatprep.subr.bf16.mxu0 %v774_v1 }
   0x6   :  { %673 = vmatpush3.bf16.msra.mxu1 %v731_v2 }
   0x7   :  { %674 = vmatprep.subr.bf16.mxu1 %v774_v1 }
   0x8   :  { %661 = vmatpush3.bf16.msra.mxu0 %v734_v4 }
   0x9   :  { %662 = vmatprep.subr.bf16.mxu0 %v774_v1 }
   0xa   :  { %675 = vmatpush3.bf16.msra.mxu1 %v733_v5 }
   0xb   :  { %676 = vmatprep.subr.bf16.mxu1 %v774_v1 }
   0xc   :  { %9 = vsyncpa [#allocation3], 0  ;;  %663 = vmatpush3.bf16.msra.mxu0 %v736_v6  ;;  %v737_v10 = vld [vmem:[%s922_s1 + $0x18] sm:$0xff]   ;;  %v21_v11 = vpack.c.bf16 %v20_v9, %v19_v8  ;;  %vm54_vm1 = vcmask 523264   ;;  %vm263_vm2 = vcmask 130048   ;;  %v738_v26 = vld [vmem:[%s924_s3] sm:$0xff]   ;;  %v356_v30 = vlaneseq }
   0xd   :  { %664 = vmatprep.subr.bf16.mxu0 %v774_v1  ;;  %v739_v27 = vld [vmem:[%s924_s3 + $0x8] sm:$0xff]   ;;  %v740_v28 = vld [vmem:[%s924_s3 + $0x10] sm:$0xff]   ;;  %v741_v29 = vld [vmem:[%s924_s3 + $0x18] sm:$0xff]   ;;  %vm365_vm4 = vcmask 64512   ;;  %vm393_vm5 = vcmask 1043456   ;;  %s778_s3 = smov 32  }
   0xe   :  { %677 = vmatpush3.bf16.msra.mxu1 %v735_v7  ;;  %v890_v31 = vshrl.u32 %v356_v30, 7  ;;  %v359_v32 = vand.u32 127, %v356_v30  ;;  %v776_v8 = vmov 1983009808   ;;  %s779_s14 = smov 16   ;;  %s780_s15 = smov 48  }
   0xf   :  { %694 = vmatprep.subr.bf16.mxu1 %v774_v1  ;;  %v485_v9 = vunpack.c.l.s4 %v776_v8  ;;  %s781_s16 = smov 80   ;;  %s782_s17 = smov 64   ;;  %vm578_vm6 = vcmask 261120   ;;  %vm580_vm7 = vcmask 392192   ;;  %vm583_vm8 = vcmask 654336  }
  0x10   :  { %665 = vmatpush3.bf16.msra.mxu0 %v737_v10  ;;  %vm360_vm3 = vcmp.le.s32.totalorder %v359_v32, %v890_v31  ;;  %s783_s18 = smov 112   ;;  %s784_s19 = smov 96   ;;  %vm585_vm9 = vcmask 785408   ;;  %vm587_vm10 = vcmask 916480  }
  0x11   :  { %679 = vmatmul.mubr.msk.bf16.vlgmr.msra.gmra.mrb[0].mxu1 %vm54_vm1, %v21_v11  ;;  %682 = vmatprep.subr.bf16.mxu0 %v774_v1  ;;  %s785_s20 = smov [#allocation2]  }
  0x12   :  { %696 = vmatprep.mubr.msk.bf16.mxu1 %vm775_vm0, %v774_v1  ;;  %s596_s21 = sshll.u32 %s785_s20, 4  ;;  %s597_s21 = int_to_ptr.vmem [resolvable:$true] %s596_s21 }
  0x13   :  { %667 = vmatmul.mubr.msk.bf16.vlgmr.msra.gmra.mrb[0].mxu0 %vm54_vm1, %v21_v11  ;;  %s750_s22 = scalar_lea.vmem %s597_s21, 32  ;;  %p755_p1 = scmp.lt.s32.totalorder %s597_s21, %s597_s21 }
  0x14   :  { %690 = vmatprep.mubr.msk.bf16.mxu0 %vm775_vm0, %v774_v1  ;;  %683 = vmatpush3.bf16.msra.mxu0 %v738_v26  ;;  %p751_p0 = scmp.ne.s32.totalorder %s597_s21, %s750_s22  ;;  %p756_p2 = scmp.lt.s32.totalorder %s750_s22, %s750_s22 }
  0x15   :  { %684 = vmatprep.subr.bf16.mxu0 %v774_v1 }
  0x16   :  { %p757_p3 = por %p756_p2, %p755_p1 }
  0x18   :  { %685 = vmatpush3.bf16.msra.mxu0 %v739_v27  ;;  %p758_p4 = pnand %p757_p3, %p751_p0 }
  0x19   :  { %686 = vmatprep.subr.bf16.mxu0 %v774_v1 }
  0x1c   :  { %687 = vmatpush3.bf16.msra.mxu0 %v740_v28 }
  0x1d   :  { %688 = vmatprep.subr.bf16.mxu0 %v774_v1 }
  0x20   :  { %689 = vmatpush3.bf16.msra.mxu0 %v741_v29 }
  0x21   :  { %706 = vmatprep.subr.bf16.mxu0 %v774_v1 }
  0x23   :  { %691 = vmatmul.mubr.msk.bf16.vlgmr.msra.gmra.mrb[4].mxu0 %vm54_vm1, %v21_v11  ;;  %v777_v11 = vmov 1934713408  }
  0x24   :  { %708 = vmatprep.mubr.msk.bf16.mxu0 %vm775_vm0, %v774_v1 }
  0xe4   :  { %v165_v12 = vpop.f32.mrb[0].mxu1 }
  0xe5   :  { %v631_v13 = vpack.c.bf16 %v165_v12, %v165_v12  ;;  %v680_v14 = vpop.f32.mrb[1].mxu1  ;;  %v516_v12 = vunpack.c.l.s4 %v777_v11 }
  0xe6   :  { %v168_v15 = vpop.f32.mrb[2].mxu1  ;;  %v92_v16 = vpop.f32.mrb[0].mxu0 }
  0xe7   :  { %v268_v17 = vsel %vm263_vm2, %v631_v13, 0  ;;  %v681_v18 = vpop.f32.mrb[3].mxu1  ;;  %v668_v19 = vpop.f32.mrb[1].mxu0  ;;  %v632_v22 = vpack.c.bf16 %v168_v15, %v168_v15  ;;  %v629_v23 = vpack.c.bf16 %v92_v16, %v92_v16  ;;  %v486_v13 = vunpack.c.0.s8 %v485_v9 }
  0xe8   :  { %695 = vmatpush3.bf16.xpose.msra.mxu1 %v268_v17  ;;  %v95_v20 = vpop.f32.mrb[2].mxu0  ;;  %v517_v17 = vunpack.c.0.s8 %v516_v12 }
  0xe9   :  { %v669_v21 = vpop.f32.mrb[3].mxu0  ;;  %700 = vmatprep.subr.bf16.mxu1 %v774_v1  ;;  %v314_v24 = vsel %vm263_vm2, %v632_v22, 0  ;;  %v630_v25 = vpack.c.bf16 %v95_v20, %v95_v20  ;;  %v489_v18 = vsub.s32 %v486_v13, %v890_v31 }
  0xea   :  { %v520_v21 = vsub.s32 %v517_v17, %v890_v31 }
  0xef   :  { %697 = vmatmul.mubr.msk.bf16.vlgmr.msra.gmra.mrb[4].mxu1 %vm263_vm2, %v629_v23 }
  0xf0   :  { %701 = vmatpush3.bf16.xpose.msra.mxu1 %v314_v24  ;;  %702 = vmatprep.mubr.msk.bf16.mxu1 %vm775_vm0, %v774_v1 }
  0xf1   :  { %712 = vmatprep.subr.bf16.mxu1 %v774_v1 }
  0xf6   :  { %v238_v55 = vpop.f32.mrb[4].mxu0 }
  0xf7   :  { %703 = vmatmul.mubr.msk.bf16.vlgmr.msra.gmra.mrb[8].mxu1 %vm263_vm2, %v630_v25  ;;  %v633_v56 = vpack.c.bf16 %v238_v55, %v238_v55  ;;  %v692_v57 = vpop.f32.mrb[5].mxu0 }
  0xf8   :  { %714 = vmatprep.mubr.msk.bf16.mxu1 %vm775_vm0, %v774_v1  ;;  %v241_v59 = vpop.f32.mrb[6].mxu0 }
  0xf9   :  { %v395_v58 = vsel %vm393_vm5, %v633_v56, 0  ;;  %v693_v60 = vpop.f32.mrb[7].mxu0  ;;  %v634_v61 = vpack.c.bf16 %v241_v59, %v241_v59 }
  0xfa   :  { %707 = vmatpush3.bf16.msra.mxu0 %v395_v58 }
  0xfb   :  { %v441_v62 = vsel %vm393_vm5, %v634_v61, 0 }
  0xfc   :  { %713 = vmatpush3.bf16.msra.mxu1 %v441_v62 }
 0x1c2   :  { %v304_v33 = vpop.f32.mrb[4].mxu1 }
 0x1c3   :  { %v363_v34 = vsel %vm360_vm3, %v304_v33, -inf  ;;  %v698_v35 = vpop.f32.mrb[5].mxu1 }
 0x1c4   :  { %v307_v36 = vpop.f32.mrb[6].mxu1  ;;  %v366_v37 = vsel %vm365_vm4, %v363_v34, -inf }
 0x1c5   :  { %367 = vmax.xlane.f32.xlu0 %v366_v37  ;;  %v699_v38 = vpop.f32.mrb[7].mxu1 }
 0x1ca   :  { %v350_v39 = vpop.f32.mrb[8].mxu1 }
 0x1cb   :  { %v364_v40 = vsel %vm360_vm3, %v350_v39, -inf  ;;  %v704_v41 = vpop.f32.mrb[9].mxu1 }
 0x1cc   :  { %v353_v42 = vpop.f32.mrb[10].mxu1  ;;  %v369_v43 = vsel %vm365_vm4, %v364_v40, -inf }
 0x1cd   :  { %370 = vmax.xlane.f32.xlu0 %v369_v43  ;;  %v705_v44 = vpop.f32.mrb[11].mxu1 }
 0x252   :  { %v368_v45 = vpop.xlane.xlu0 %367 }
 0x253   :  { %v372_v46 = vsub.f32 %v363_v34, %v368_v45 }
 0x255   :  { %v374_v47 = vmul.f32 1.442695, %v372_v46 }
 0x257   :  { %742 = vpow2.f32 %v374_v47 }
 0x25a   :  { %v371_v48 = vpop.xlane.xlu0 %370 }
 0x25b   :  { %v373_v49 = vsub.f32 %v364_v40, %v371_v48 }
 0x25d   :  { %v376_v50 = vmul.f32 1.442695, %v373_v49 }
 0x25f   :  { %744 = vpow2.f32 %v376_v50 }
 0x261   :  { %v743_v51 = vpop.eup %742 }
 0x262   :  { %v378_v52 = vsel %vm365_vm4, %v743_v51, 0.0 }
 0x263   :  { %379 = vadd.xlane.f32.xlu1 %v378_v52 }
 0x269   :  { %v745_v53 = vpop.eup %744 }
 0x26a   :  { %v381_v54 = vsel %vm365_vm4, %v745_v53, 0.0 }
 0x26b   :  { %382 = vadd.xlane.f32.xlu1 %v381_v54 }
 0x2f0   :  { %v380_v63 = vpop.xlane.xlu1 %379 }
 0x2f1   :  { %746 = vrcp.f32 %v380_v63 }
 0x2f8   :  { %v383_v0 = vpop.xlane.xlu1 %382 }
 0x2f9   :  { %748 = vrcp.f32 %v383_v0 }
 0x2fb   :  { %v747_v2 = vpop.eup %746 }
 0x2fc   :  { %v386_v3 = vmul.f32 %v747_v2, %v743_v51 }
 0x2fe   :  { %v388_v4 = vpack.c.bf16 %v386_v3, %v386_v3 }
 0x300   :  { %709 = vmatmul.mubr.msk.bf16.vlgmr.msra.gmra.mrb[8].mxu0 %vm365_vm4, %v388_v4 }
 0x303   :  { %v749_v5 = vpop.eup %748 }
 0x304   :  { %v387_v6 = vmul.f32 %v749_v5, %v745_v53 }
 0x306   :  { %v389_v7 = vpack.c.bf16 %v387_v6, %v387_v6 }
 0x308   :  { %715 = vmatmul.mubr.msk.bf16.vlgmr.msra.gmra.mrb[12].mxu1 %vm365_vm4, %v389_v7 }
 0x3d3   :  { %v431_v10 = vpop.f32.mrb[8].mxu0 }
 0x3d4   :  { %v710_v14 = vpop.f32.mrb[9].mxu0  ;;  %v483_v19 = vcombine.high %v431_v10, %v774_v1  ;;  %v490_v22 = vrot.slane %v431_v10, %v489_v18 }
 0x3d5   :  { %v434_v15 = vpop.f32.mrb[10].mxu0 }
 0x3d6   :  { %v711_v16 = vpop.f32.mrb[11].mxu0  ;;  %v497_v27 = vrot.slane %v483_v19, %v489_v18 }
 0x3db   :  { %v477_v20 = vpop.f32.mrb[12].mxu1 }
 0x3dc   :  { %v498_v23 = vcombine.high %v477_v20, %v774_v1  ;;  %v505_v24 = vrot.slane %v477_v20, %v489_v18  ;;  %v716_v25 = vpop.f32.mrb[13].mxu1 }
 0x3dd   :  { %v480_v26 = vpop.f32.mrb[14].mxu1 }
 0x3de   :  { %v512_v28 = vrot.slane %v498_v23, %v489_v18  ;;  %v513_v29 = vcombine.low %v490_v22, %v505_v24  ;;  %v514_v30 = vcombine.high %v490_v22, %v505_v24  ;;  %v717_v32 = vpop.f32.mrb[15].mxu1 }
 0x3e0   :  { %v521_v33 = vrot.slane %v513_v29, %v520_v21  ;;  %v529_v34 = vcombine.low %v497_v27, %v512_v28  ;;  %v530_v35 = vcombine.high %v497_v27, %v512_v28  ;;  %v528_v36 = vrot.slane %v514_v30, %v520_v21 }
 0x3e2   :  { %554 = vrot.lane.b32.xlu1 %v528_v36, %s778_s3  ;;  %v545_v37 = vcombine.high %v521_v33, %v774_v1  ;;  %v537_v31 = vrot.slane %v529_v34, %v520_v21  ;;  %v546_v38 = vcombine.high %v528_v36, %v774_v1  ;;  %v544_v40 = vrot.slane %v530_v35, %v520_v21 }
 0x3e4   :  { %550 = vrot.lane.b32.xlu0 %v545_v37, %s779_s14  ;;  %v547_v39 = vcombine.high %v537_v31, %v774_v1  ;;  %v548_v41 = vcombine.high %v544_v40, %v774_v1 }
 0x3e6   :  { %558 = vrot.lane.b32.xlu1 %v546_v38, %s780_s15 }
 0x3e8   :  { %566 = vrot.lane.b32.xlu0 %v547_v39, %s781_s16 }
 0x3ea   :  { %562 = vrot.lane.b32.xlu1 %v537_v31, %s782_s17 }
 0x3ec   :  { %574 = vrot.lane.b32.xlu0 %v548_v41, %s783_s18 }
 0x3ee   :  { %570 = vrot.lane.b32.xlu1 %v544_v40, %s784_s19 }
 0x454   :  { %v555_v42 = vpop.permute.xlu1 %554 }
 0x456   :  { %v551_v43 = vpop.permute.xlu0 %550 }
 0x457   :  { %v577_v44 = vsel %vm263_vm2, %v521_v33, %v551_v43 }
 0x458   :  { %v559_v45 = vpop.permute.xlu1 %558  ;;  %v579_v46 = vsel %vm578_vm6, %v577_v44, %v555_v42 }
 0x459   :  { %v581_v48 = vsel %vm580_vm7, %v579_v46, %v559_v45 }
 0x45a   :  { %v567_v47 = vpop.permute.xlu0 %566 }
 0x45c   :  { %v563_v49 = vpop.permute.xlu1 %562 }
 0x45d   :  { %v582_v50 = vsel %vm54_vm1, %v581_v48, %v563_v49 }
 0x45e   :  { %v584_v51 = vsel %vm583_vm8, %v582_v50, %v567_v47  ;;  %v575_v52 = vpop.permute.xlu0 %574 }
 0x460   :  { %v571_v1 = vpop.permute.xlu1 %570 }
 0x461   :  { %v586_v53 = vsel %vm585_vm9, %v584_v51, %v571_v1 }
 0x462   :  { %v588_v54 = vsel %vm587_vm10, %v586_v53, %v575_v52 }
 0x463   :  { %589 = vst [vmem:[#allocation2] sm:$0x3] %v588_v54 }
 0x464   :  { %761 = shalt.err (!%p758_p4)
}
 0x465   :  { %s762_s25 = scalar_lea.hbm %s925_s4, 32 }
 0x466   :  { %p763_p5 = scmp.ne.s32.totalorder %s925_s4, %s762_s25  ;;  %p766_p6 = scmp.lt.u32.totalorder %s762_s25, %s925_s4 }
 0x468   :  { %p768_p7 = pnand %p766_p6, %p763_p5 }
 0x46a   :  { %771 = shalt.err (!%p768_p7)
}
 0x46b   :  { %599 = dma.vmem_to_hbm [thread:$0]  %s597_s21, 32, %s925_s4, [#allocation3]  }
 0x46c   :  { %772 = dma.done.wait [#allocation3], 32  }
 0x46d   :  { %773 = vsyncadd [#allocation3], 4294967264 }
 0x46e   :  { %603 = vsyncpa [#allocation3], 1 }

// kernel: tpu_custom_call.1
= control target key start
LH: loop header
LB: loop body
LE: loop exit
PB: predicated region body
PF: predicated region fallthrough
CT: control target
= control target key end

     0   :  { %v664_v1 = vmov 0.0   ;;  %vm665_vm0 = vmmov 0   ;;  %s793_s0 = inlined_call_operand.vmem [shape: f32[16,64], index: 0, kind: input, shape index: {}]   ;;  %s794_s1 = inlined_call_operand.vmem [shape: bf16[64,16], index: 1, kind: input, shape index: {}]   ;;  %s795_s2 = inlined_call_operand.vmem [shape: bf16[64,16], index: 2, kind: input, shape index: {}]   ;;  %s796_s3 = inlined_call_operand.vmem [shape: bf16[64,16], index: 3, kind: input, shape index: {}]   ;;  %s797_s4 = inlined_call_operand.hbm [shape: f32[2,8,16], index: 4, kind: output, shape index: {}]  }
   0x1   :  { %v620_v0 = vld [vmem:[%s795_s2] sm:$0xff]   ;;  %567 = vmatprep.subr.bf16.mxu1 %v664_v1  ;;  %v621_v2 = vld [vmem:[%s795_s2 + $0x8] sm:$0xff]   ;;  %555 = vmatprep.subr.bf16.mxu0 %v664_v1  ;;  %v623_v5 = vld [vmem:[%s795_s2 + $0x10] sm:$0xff]  }
   0x2   :  { %568 = vmatpush3.bf16.msra.mxu1 %v620_v0  ;;  %v622_v3 = vld [vmem:[%s794_s1] sm:$0xff]   ;;  %575 = vmatprep.mubr.msk.bf16.mxu1 %vm665_vm0, %v664_v1  ;;  %v624_v4 = vld [vmem:[%s794_s1 + $0x8] sm:$0xff]   ;;  %v626_v6 = vld [vmem:[%s794_s1 + $0x10] sm:$0xff]  }
   0x3   :  { %569 = vmatprep.subr.bf16.mxu1 %v664_v1  ;;  %563 = vmatprep.mubr.msk.bf16.mxu0 %vm665_vm0, %v664_v1  ;;  %v625_v7 = vld [vmem:[%s795_s2 + $0x18] sm:$0xff]   ;;  %v19_v8 = vld [vmem:[%s793_s0] sm:$0xff]  ;;  %v20_v9 = vld [vmem:[%s793_s0 + $0x8] sm:$0xff] }
   0x4   :  { %556 = vmatpush3.bf16.msra.mxu0 %v622_v3 }
   0x5   :  { %557 = vmatprep.subr.bf16.mxu0 %v664_v1 }
   0x6   :  { %570 = vmatpush3.bf16.msra.mxu1 %v621_v2 }
   0x7   :  { %571 = vmatprep.subr.bf16.mxu1 %v664_v1 }
   0x8   :  { %558 = vmatpush3.bf16.msra.mxu0 %v624_v4 }
   0x9   :  { %559 = vmatprep.subr.bf16.mxu0 %v664_v1 }
   0xa   :  { %572 = vmatpush3.bf16.msra.mxu1 %v623_v5 }
   0xb   :  { %573 = vmatprep.subr.bf16.mxu1 %v664_v1 }
   0xc   :  { %9 = vsyncpa [#allocation3], 0  ;;  %560 = vmatpush3.bf16.msra.mxu0 %v626_v6  ;;  %v627_v10 = vld [vmem:[%s794_s1 + $0x18] sm:$0xff]   ;;  %v21_v11 = vpack.c.bf16 %v20_v9, %v19_v8  ;;  %vm54_vm1 = vcmask 523264   ;;  %vm263_vm2 = vcmask 130048   ;;  %v628_v26 = vld [vmem:[%s796_s3] sm:$0xff]   ;;  %v356_v30 = vlaneseq }
   0xd   :  { %561 = vmatprep.subr.bf16.mxu0 %v664_v1  ;;  %v629_v27 = vld [vmem:[%s796_s3 + $0x8] sm:$0xff]   ;;  %v630_v28 = vld [vmem:[%s796_s3 + $0x10] sm:$0xff]   ;;  %v631_v29 = vld [vmem:[%s796_s3 + $0x18] sm:$0xff]   ;;  %vm365_vm4 = vcmask 64512   ;;  %vm393_vm5 = vcmask 1043456   ;;  %s666_s3 = smov [#allocation2]  }
   0xe   :  { %574 = vmatpush3.bf16.msra.mxu1 %v625_v7  ;;  %v357_v31 = vshrl.u32 %v356_v30, 7  ;;  %v359_v32 = vand.u32 127, %v356_v30  ;;  %s490_s14 = sshll.u32 %s666_s3, 4  ;;  %s491_s14 = int_to_ptr.vmem [resolvable:$true] %s490_s14 }
   0xf   :  { %591 = vmatprep.subr.bf16.mxu1 %v664_v1  ;;  %s640_s15 = scalar_lea.vmem %s491_s14, 256  ;;  %p645_p1 = scmp.lt.s32.totalorder %s491_s14, %s491_s14 }
  0x10   :  { %562 = vmatpush3.bf16.msra.mxu0 %v627_v10  ;;  %vm360_vm3 = vcmp.le.s32.totalorder %v359_v32, %v357_v31  ;;  %p641_p0 = scmp.ne.s32.totalorder %s491_s14, %s640_s15  ;;  %p646_p2 = scmp.lt.s32.totalorder %s640_s15, %s640_s15 }
  0x11   :  { %576 = vmatmul.mubr.msk.bf16.vlgmr.msra.gmra.mrb[0].mxu1 %vm54_vm1, %v21_v11  ;;  %579 = vmatprep.subr.bf16.mxu0 %v664_v1 }
  0x12   :  { %593 = vmatprep.mubr.msk.bf16.mxu1 %vm665_vm0, %v664_v1  ;;  %p647_p3 = por %p646_p2, %p645_p1 }
  0x13   :  { %564 = vmatmul.mubr.msk.bf16.vlgmr.msra.gmra.mrb[0].mxu0 %vm54_vm1, %v21_v11 }
  0x14   :  { %587 = vmatprep.mubr.msk.bf16.mxu0 %vm665_vm0, %v664_v1  ;;  %580 = vmatpush3.bf16.msra.mxu0 %v628_v26  ;;  %p648_p4 = pnand %p647_p3, %p641_p0 }
  0x15   :  { %581 = vmatprep.subr.bf16.mxu0 %v664_v1 }
  0x18   :  { %582 = vmatpush3.bf16.msra.mxu0 %v629_v27 }
  0x19   :  { %583 = vmatprep.subr.bf16.mxu0 %v664_v1 }
  0x1c   :  { %584 = vmatpush3.bf16.msra.mxu0 %v630_v28 }
  0x1d   :  { %585 = vmatprep.subr.bf16.mxu0 %v664_v1 }
  0x20   :  { %586 = vmatpush3.bf16.msra.mxu0 %v631_v29 }
  0x21   :  { %603 = vmatprep.subr.bf16.mxu0 %v664_v1 }
  0x23   :  { %588 = vmatmul.mubr.msk.bf16.vlgmr.msra.gmra.mrb[4].mxu0 %vm54_vm1, %v21_v11 }
  0x24   :  { %605 = vmatprep.mubr.msk.bf16.mxu0 %vm665_vm0, %v664_v1 }
  0xe4   :  { %v165_v12 = vpop.f32.mrb[0].mxu1 }
  0xe5   :  { %v528_v13 = vpack.c.bf16 %v165_v12, %v165_v12  ;;  %v577_v14 = vpop.f32.mrb[1].mxu1 }
  0xe6   :  { %v168_v15 = vpop.f32.mrb[2].mxu1  ;;  %v92_v16 = vpop.f32.mrb[0].mxu0 }
  0xe7   :  { %v268_v17 = vsel %vm263_vm2, %v528_v13, 0  ;;  %v578_v18 = vpop.f32.mrb[3].mxu1  ;;  %v565_v19 = vpop.f32.mrb[1].mxu0  ;;  %v529_v22 = vpack.c.bf16 %v168_v15, %v168_v15  ;;  %v526_v23 = vpack.c.bf16 %v92_v16, %v92_v16 }
  0xe8   :  { %592 = vmatpush3.bf16.xpose.msra.mxu1 %v268_v17  ;;  %v95_v20 = vpop.f32.mrb[2].mxu0 }
  0xe9   :  { %v566_v21 = vpop.f32.mrb[3].mxu0  ;;  %597 = vmatprep.subr.bf16.mxu1 %v664_v1  ;;  %v314_v24 = vsel %vm263_vm2, %v529_v22, 0  ;;  %v527_v25 = vpack.c.bf16 %v95_v20, %v95_v20 }
  0xef   :  { %594 = vmatmul.mubr.msk.bf16.vlgmr.msra.gmra.mrb[4].mxu1 %vm263_vm2, %v526_v23 }
  0xf0   :  { %598 = vmatpush3.bf16.xpose.msra.mxu1 %v314_v24  ;;  %599 = vmatprep.mubr.msk.bf16.mxu1 %vm665_vm0, %v664_v1 }
  0xf1   :  { %609 = vmatprep.subr.bf16.mxu1 %v664_v1 }
  0xf6   :  { %v238_v55 = vpop.f32.mrb[4].mxu0 }
  0xf7   :  { %600 = vmatmul.mubr.msk.bf16.vlgmr.msra.gmra.mrb[8].mxu1 %vm263_vm2, %v527_v25  ;;  %v530_v56 = vpack.c.bf16 %v238_v55, %v238_v55  ;;  %v589_v57 = vpop.f32.mrb[5].mxu0 }
  0xf8   :  { %611 = vmatprep.mubr.msk.bf16.mxu1 %vm665_vm0, %v664_v1  ;;  %v241_v59 = vpop.f32.mrb[6].mxu0 }
  0xf9   :  { %v395_v58 = vsel %vm393_vm5, %v530_v56, 0  ;;  %v590_v60 = vpop.f32.mrb[7].mxu0  ;;  %v531_v61 = vpack.c.bf16 %v241_v59, %v241_v59 }
  0xfa   :  { %604 = vmatpush3.bf16.msra.mxu0 %v395_v58 }
  0xfb   :  { %v441_v62 = vsel %vm393_vm5, %v531_v61, 0 }
  0xfc   :  { %610 = vmatpush3.bf16.msra.mxu1 %v441_v62 }
 0x1c2   :  { %v304_v33 = vpop.f32.mrb[4].mxu1 }
 0x1c3   :  { %v363_v34 = vsel %vm360_vm3, %v304_v33, -inf  ;;  %v595_v35 = vpop.f32.mrb[5].mxu1 }
 0x1c4   :  { %v307_v36 = vpop.f32.mrb[6].mxu1  ;;  %v366_v37 = vsel %vm365_vm4, %v363_v34, -inf }
 0x1c5   :  { %367 = vmax.xlane.f32.xlu0 %v366_v37  ;;  %v596_v38 = vpop.f32.mrb[7].mxu1 }
 0x1ca   :  { %v350_v39 = vpop.f32.mrb[8].mxu1 }
 0x1cb   :  { %v364_v40 = vsel %vm360_vm3, %v350_v39, -inf  ;;  %v601_v41 = vpop.f32.mrb[9].mxu1 }
 0x1cc   :  { %v353_v42 = vpop.f32.mrb[10].mxu1  ;;  %v369_v43 = vsel %vm365_vm4, %v364_v40, -inf }
 0x1cd   :  { %370 = vmax.xlane.f32.xlu0 %v369_v43  ;;  %v602_v44 = vpop.f32.mrb[11].mxu1 }
 0x252   :  { %v368_v45 = vpop.xlane.xlu0 %367 }
 0x253   :  { %v372_v46 = vsub.f32 %v363_v34, %v368_v45 }
 0x255   :  { %v374_v47 = vmul.f32 1.442695, %v372_v46 }
 0x257   :  { %632 = vpow2.f32 %v374_v47 }
 0x25a   :  { %v371_v48 = vpop.xlane.xlu0 %370 }
 0x25b   :  { %v373_v49 = vsub.f32 %v364_v40, %v371_v48 }
 0x25d   :  { %v376_v50 = vmul.f32 1.442695, %v373_v49 }
 0x25f   :  { %634 = vpow2.f32 %v376_v50 }
 0x261   :  { %v633_v51 = vpop.eup %632 }
 0x262   :  { %v378_v52 = vsel %vm365_vm4, %v633_v51, 0.0 }
 0x263   :  { %379 = vadd.xlane.f32.xlu1 %v378_v52 }
 0x269   :  { %v635_v53 = vpop.eup %634 }
 0x26a   :  { %v381_v54 = vsel %vm365_vm4, %v635_v53, 0.0 }
 0x26b   :  { %382 = vadd.xlane.f32.xlu1 %v381_v54 }
 0x2f0   :  { %v380_v63 = vpop.xlane.xlu1 %379 }
 0x2f1   :  { %636 = vrcp.f32 %v380_v63 }
 0x2f8   :  { %v383_v0 = vpop.xlane.xlu1 %382 }
 0x2f9   :  { %638 = vrcp.f32 %v383_v0 }
 0x2fb   :  { %v637_v1 = vpop.eup %636 }
 0x2fc   :  { %v386_v2 = vmul.f32 %v637_v1, %v633_v51 }
 0x2fe   :  { %v388_v3 = vpack.c.bf16 %v386_v2, %v386_v2 }
 0x300   :  { %606 = vmatmul.mubr.msk.bf16.vlgmr.msra.gmra.mrb[8].mxu0 %vm365_vm4, %v388_v3 }
 0x303   :  { %v639_v4 = vpop.eup %638 }
 0x304   :  { %v387_v5 = vmul.f32 %v639_v4, %v635_v53 }
 0x306   :  { %v389_v6 = vpack.c.bf16 %v387_v5, %v387_v5 }
 0x308   :  { %612 = vmatmul.mubr.msk.bf16.vlgmr.msra.gmra.mrb[12].mxu1 %vm365_vm4, %v389_v6 }
 0x3d3   :  { %v431_v7 = vpop.f32.mrb[8].mxu0 }
 0x3d4   :  { %483 = vst.msk [vmem:[#allocation2] sm:$0xff] %vm263_vm2, %v431_v7  ;;  %v607_v8 = vpop.f32.mrb[9].mxu0 }
 0x3d5   :  { %v434_v9 = vpop.f32.mrb[10].mxu0 }
 0x3d6   :  { %v608_v10 = vpop.f32.mrb[11].mxu0 }
 0x3db   :  { %v477_v11 = vpop.f32.mrb[12].mxu1 }
 0x3dc   :  { %484 = vst.msk [vmem:[#allocation2 + $0x8] sm:$0xff] %vm263_vm2, %v477_v11  ;;  %v613_v12 = vpop.f32.mrb[13].mxu1 }
 0x3dd   :  { %v480_v13 = vpop.f32.mrb[14].mxu1 }
 0x3de   :  { %651 = shalt.err (!%p648_p4)
}
 0x3df   :  { %s652_s18 = scalar_lea.hbm %s797_s4, 256 }
 0x3e0   :  { %p653_p5 = scmp.ne.s32.totalorder %s797_s4, %s652_s18  ;;  %p656_p6 = scmp.lt.u32.totalorder %s652_s18, %s797_s4 }
 0x3e2   :  { %p658_p7 = pnand %p656_p6, %p653_p5 }
 0x3e4   :  { %661 = shalt.err (!%p658_p7)
}
 0x3e5   :  { %s667_s23 = smov 128   ;;  %s668_s24 = smov 8   ;;  %v614_v14 = vpop.f32.mrb[15].mxu1 }
 0x3e6   :  { %496 = dma.vmem_to_hbm [thread:$0]  %s491_s14, 256, %s797_s4, [#allocation3], %s667_s23, %s667_s23, %s668_s24  }
 0x3e7   :  { %662 = dma.done.wait [#allocation3], 256  }
 0x3e8   :  { %663 = vsyncadd [#allocation3], 4294967040 }
 0x3e9   :  { %500 = vsyncpa [#allocation3], 1 }

</bundles_post_ra>
